<compile_context>
chip_gen: v6e
topology: v6e:2x2x1
jax: 0.10.0
libtpu: 0.0.40
codegen_flags: <defaults>
</compile_context>

<pallas_src>
import jax
import jax.numpy as jnp
from jax.experimental import pallas as pl
from jax.experimental.pallas import tpu as pltpu

EPS = 1e-5
LANES = 128
_VMEM_LIMIT_BYTES = 64 * 1024 * 1024          # explicit scoped-VMEM limit
_BLOCK_BUDGET_BYTES = 4 * 1024 * 1024         # ~4 MiB per x block (v7x-safe)


# ----------------------------- kernels ---------------------------------------

def _revin_norm_kernel(x_ref, w_ref, b_ref, y_ref, mean_ref, std_ref):
    # x_ref block: (BB, T, TC); w_ref/b_ref: (1, 1, TC)
    x = x_ref[...].astype(jnp.float32)
    mean = jnp.mean(x, axis=1, keepdims=True)               # (BB, 1, TC) XLU
    xc = x - mean
    var = jnp.mean(xc * xc, axis=1, keepdims=True)          # biased variance
    inv_std = jax.lax.rsqrt(var + EPS)                      # C-wide rsqrt (EUP)
    std = (var + EPS) * inv_std                             # == sqrt(var + eps)
    scale = w_ref[...].astype(jnp.float32) * inv_std        # (BB, 1, TC)
    bias = b_ref[...].astype(jnp.float32)
    # Single mul + add per element on the T*C-wide path.
    y_ref[...] = (xc * scale + bias).astype(y_ref.dtype)
    mean_ref[...] = mean.astype(mean_ref.dtype)
    std_ref[...] = std.astype(std_ref.dtype)


def _revin_denorm_kernel(x_ref, mean_ref, std_ref, w_ref, b_ref, y_ref):
    # x_ref block: (BB, T, TC); mean/std: (BB, 1, TC); w/b: (1, 1, TC)
    x = x_ref[...].astype(jnp.float32)
    mean = mean_ref[...].astype(jnp.float32)
    std = std_ref[...].astype(jnp.float32)
    w = w_ref[...].astype(jnp.float32)
    b = b_ref[...].astype(jnp.float32)
    inv_w = 1.0 / (w + EPS * EPS)                           # per-channel only
    scale = std * inv_w                                     # (BB, 1, TC)
    shift = mean - b * scale
    # Single mul + add per element; no T*C-wide divides.
    y_ref[...] = (x * scale + shift).astype(y_ref.dtype)


# ----------------------------- tiling helpers ---------------------------------

def _pad_axis(a, axis, new_size, value):
    pad = new_size - a.shape[axis]
    if pad == 0:
        return a
    widths = [(0, 0)] * a.ndim
    widths[axis] = (0, pad)
    return jnp.pad(a, widths, constant_values=value)


def _choose_tc(c_pad, t, itemsize=4, budget=_BLOCK_BUDGET_BYTES):
    """Largest lane tile (multiple of 128, dividing c_pad, <= 1024 lanes)
    whose (T, TC) f32 slab stays within the per-block budget."""
    best = LANES
    tc = LANES
    while tc <= min(c_pad, 8 * LANES):
        if c_pad % tc == 0 and t * tc * itemsize <= budget:
            best = tc
        tc += LANES
    return best
    # TODO(synk): for extremely large T (T*128*4B > budget) a time-tiled
    # two-pass reduction would be needed; not required at these shapes.


def _choose_bb(b, t, tc, n_c, itemsize=4, budget=_BLOCK_BUDGET_BYTES):
    """Pack batches per block (divisor of B) up to the VMEM budget, but keep
    at least two grid steps when possible so v7x can shard across its 2 TCs."""
    per_batch = t * tc * itemsize
    bb_cap = max(1, min(b, budget // max(per_batch, 1)))
    bb = 1
    for d in range(1, bb_cap + 1):
        if b % d == 0:
            bb = d
    while bb > 1 and (b // bb) * n_c < 2:
        cand = bb - 1
        while cand > 1 and b % cand != 0:
            cand -= 1
        bb = cand
    return bb


def _tiling(B, T, C):
    c_pad = ((C + LANES - 1) // LANES) * LANES
    tc = _choose_tc(c_pad, T)
    n_c = c_pad // tc
    bb = _choose_bb(B, T, tc, n_c)
    n_b = B // bb
    return c_pad, tc, n_c, bb, n_b


# ----------------------------- wrappers ---------------------------------------

def revin_norm(x, affine_weight, affine_bias):
    """x: [B, T, C] -> (y [B,T,C], mean [B,1,C], stdev [B,1,C])."""
    B, T, C = x.shape
    c_pad, tc, n_c, bb, n_b = _tiling(B, T, C)

    xp = _pad_axis(x, 2, c_pad, 0.0)
    wp = _pad_axis(affine_weight.reshape(1, 1, C), 2, c_pad, 1.0)
    bp = _pad_axis(affine_bias.reshape(1, 1, C), 2, c_pad, 0.0)

    grid_spec = pltpu.PrefetchScalarGridSpec(
        num_scalar_prefetch=0,
        grid=(n_b, n_c),
        in_specs=[
            pl.BlockSpec((bb, T, tc), lambda i, c: (i, 0, c)),
            pl.BlockSpec((1, 1, tc), lambda i, c: (0, 0, c)),
            pl.BlockSpec((1, 1, tc), lambda i, c: (0, 0, c)),
        ],
        out_specs=[
            pl.BlockSpec((bb, T, tc), lambda i, c: (i, 0, c)),
            pl.BlockSpec((bb, 1, tc), lambda i, c: (i, 0, c)),
            pl.BlockSpec((bb, 1, tc), lambda i, c: (i, 0, c)),
        ],
    )
    y, mean, std = pl.pallas_call(
        _revin_norm_kernel,
        grid_spec=grid_spec,
        out_shape=(
            jax.ShapeDtypeStruct((B, T, c_pad), x.dtype),
            jax.ShapeDtypeStruct((B, 1, c_pad), jnp.float32),
            jax.ShapeDtypeStruct((B, 1, c_pad), jnp.float32),
        ),
        compiler_params=pltpu.CompilerParams(
            dimension_semantics=("parallel", "parallel"),
            vmem_limit_bytes=_VMEM_LIMIT_BYTES,
        ),
    )(xp, wp, bp)
    return y[:, :, :C], mean[:, :, :C], std[:, :, :C]


def revin_denorm(x, mean, stdev, affine_weight, affine_bias):
    """x: [B, T, C] (normalized) -> denormalized [B, T, C]."""
    B, T, C = x.shape
    c_pad, tc, n_c, bb, n_b = _tiling(B, T, C)

    xp = _pad_axis(x, 2, c_pad, 0.0)
    mp = _pad_axis(mean, 2, c_pad, 0.0)
    sp = _pad_axis(stdev, 2, c_pad, 0.0)
    wp = _pad_axis(affine_weight.reshape(1, 1, C), 2, c_pad, 1.0)
    bp = _pad_axis(affine_bias.reshape(1, 1, C), 2, c_pad, 0.0)

    grid_spec = pltpu.PrefetchScalarGridSpec(
        num_scalar_prefetch=0,
        grid=(n_b, n_c),
        in_specs=[
            pl.BlockSpec((bb, T, tc), lambda i, c: (i, 0, c)),
            pl.BlockSpec((bb, 1, tc), lambda i, c: (i, 0, c)),
            pl.BlockSpec((bb, 1, tc), lambda i, c: (i, 0, c)),
            pl.BlockSpec((1, 1, tc), lambda i, c: (0, 0, c)),
            pl.BlockSpec((1, 1, tc), lambda i, c: (0, 0, c)),
        ],
        out_specs=pl.BlockSpec((bb, T, tc), lambda i, c: (i, 0, c)),
    )
    y = pl.pallas_call(
        _revin_denorm_kernel,
        grid_spec=grid_spec,
        out_shape=jax.ShapeDtypeStruct((B, T, c_pad), x.dtype),
        compiler_params=pltpu.CompilerParams(
            dimension_semantics=("parallel", "parallel"),
            vmem_limit_bytes=_VMEM_LIMIT_BYTES,
        ),
    )(xp, mp, sp, wp, bp)
    return y[:, :, :C]


# ----------------------------- driver ------------------------------------------

if __name__ == "__main__":
    B, T, C = 2, 8, 4   # batch, seq_len, num_features
    key = jax.random.PRNGKey(0)
    x = jax.random.normal(key, (B, T, C), dtype=jnp.float32) * 3.0 + 1.5

    # Deterministic parameter init (matches nn.Parameter(ones) / (zeros)).
    affine_weight = jnp.ones((C,), dtype=jnp.float32)
    affine_bias = jnp.zeros((C,), dtype=jnp.float32)

    # mode == 'norm'
    y, mean, stdev = revin_norm(x, affine_weight, affine_bias)
    jax.block_until_ready((y, mean, stdev))

    # mode == 'denorm' (round-trip)
    x_rec = revin_denorm(y, mean, stdev, affine_weight, affine_bias)
    jax.block_until_ready(x_rec)

    # Reference check against plain JAX semantics of the PyTorch module.
    ref_mean = jnp.mean(x, axis=1, keepdims=True)
    ref_std = jnp.sqrt(jnp.var(x, axis=1, keepdims=True) + EPS)  # unbiased=False
    ref_y = (x - ref_mean) / ref_std * affine_weight + affine_bias
    assert jnp.allclose(mean, ref_mean, atol=1e-5), "mean mismatch"
    assert jnp.allclose(stdev, ref_std, atol=1e-5), "stdev mismatch"
    assert jnp.allclose(y, ref_y, atol=1e-5), "norm mismatch"
    assert jnp.allclose(x_rec, x, atol=1e-4), "denorm round-trip mismatch"

    print("KERNEL_OK")
</pallas_src>

<mosaic_0001>
module attributes {stable_mosaic.version = 11 : i64} {
  func.func @_revin_norm_kernel(%arg0: i32, %arg1: i32, %arg2: memref<1x8x128xf32, #tpu.memory_space<vmem>>, %arg3: memref<1x1x128xf32, #tpu.memory_space<vmem>>, %arg4: memref<1x1x128xf32, #tpu.memory_space<vmem>>, %arg5: memref<1x8x128xf32, #tpu.memory_space<vmem>>, %arg6: memref<1x1x128xf32, #tpu.memory_space<vmem>>, %arg7: memref<1x1x128xf32, #tpu.memory_space<vmem>>) attributes {dimension_semantics = [#tpu.dimension_semantics<parallel>, #tpu.dimension_semantics<parallel>], iteration_bounds = array<i64: 2, 1>, scalar_prefetch = 0 : i64, scratch_operands = 0 : i64, tpu.core_type = #tpu.core_type<tc>, window_params = [{transform_indices = @transform_0, window_bounds = array<i64: 1, 8, 128>}, {transform_indices = @transform_1, window_bounds = array<i64: 1, 1, 128>}, {transform_indices = @transform_2, window_bounds = array<i64: 1, 1, 128>}, {transform_indices = @transform_3, window_bounds = array<i64: 1, 8, 128>}, {transform_indices = @transform_4, window_bounds = array<i64: 1, 1, 128>}, {transform_indices = @transform_5, window_bounds = array<i64: 1, 1, 128>}]} {
    %c0 = arith.constant 0 : index
    %c0_0 = arith.constant 0 : index
    %c0_1 = arith.constant 0 : index
    %0 = vector.load %arg2[%c0, %c0_0, %c0_1] : memref<1x8x128xf32, #tpu.memory_space<vmem>>, vector<1x8x128xf32>
    %cst = arith.constant dense<0.000000e+00> : vector<1x128xf32>
    %1 = vector.multi_reduction <add>, %0, %cst [1] : vector<1x8x128xf32> to vector<1x128xf32>
    %2 = vector.shape_cast %1 : vector<1x128xf32> to vector<1x1x128xf32>
    %cst_2 = arith.constant 8.000000e+00 : f32
    %3 = vector.broadcast %cst_2 : f32 to vector<1x1x128xf32>
    %4 = arith.divf %2, %3 : vector<1x1x128xf32>
    %5 = vector.broadcast %4 : vector<1x1x128xf32> to vector<1x8x128xf32>
    %6 = arith.subf %0, %5 : vector<1x8x128xf32>
    %7 = arith.mulf %6, %6 : vector<1x8x128xf32>
    %cst_3 = arith.constant dense<0.000000e+00> : vector<1x128xf32>
    %8 = vector.multi_reduction <add>, %7, %cst_3 [1] : vector<1x8x128xf32> to vector<1x128xf32>
    %9 = vector.shape_cast %8 : vector<1x128xf32> to vector<1x1x128xf32>
    %cst_4 = arith.constant 8.000000e+00 : f32
    %10 = vector.broadcast %cst_4 : f32 to vector<1x1x128xf32>
    %11 = arith.divf %9, %10 : vector<1x1x128xf32>
    %cst_5 = arith.constant 9.99999974E-6 : f32
    %12 = vector.broadcast %cst_5 : f32 to vector<1x1x128xf32>
    %13 = arith.addf %11, %12 : vector<1x1x128xf32>
    %14 = math.rsqrt %13 : vector<1x1x128xf32>
    %cst_6 = arith.constant 9.99999974E-6 : f32
    %15 = vector.broadcast %cst_6 : f32 to vector<1x1x128xf32>
    %16 = arith.addf %11, %15 : vector<1x1x128xf32>
    %17 = arith.mulf %16, %14 : vector<1x1x128xf32>
    %c0_7 = arith.constant 0 : index
    %c0_8 = arith.constant 0 : index
    %c0_9 = arith.constant 0 : index
    %18 = vector.load %arg3[%c0_7, %c0_8, %c0_9] : memref<1x1x128xf32, #tpu.memory_space<vmem>>, vector<1x1x128xf32>
    %19 = arith.mulf %18, %14 : vector<1x1x128xf32>
    %c0_10 = arith.constant 0 : index
    %c0_11 = arith.constant 0 : index
    %c0_12 = arith.constant 0 : index
    %20 = vector.load %arg4[%c0_10, %c0_11, %c0_12] : memref<1x1x128xf32, #tpu.memory_space<vmem>>, vector<1x1x128xf32>
    %21 = vector.broadcast %19 : vector<1x1x128xf32> to vector<1x8x128xf32>
    %22 = arith.mulf %6, %21 : vector<1x8x128xf32>
    %23 = vector.broadcast %20 : vector<1x1x128xf32> to vector<1x8x128xf32>
    %24 = arith.addf %22, %23 : vector<1x8x128xf32>
    %c0_13 = arith.constant 0 : index
    %c0_14 = arith.constant 0 : index
    %c0_15 = arith.constant 0 : index
    %25 = vector.load %arg5[%c0_13, %c0_14, %c0_15] : memref<1x8x128xf32, #tpu.memory_space<vmem>>, vector<1x8x128xf32>
    tpu.vector_store %arg5[%c0_13, %c0_14, %c0_15], %24 {strides = array<i32>} : memref<1x8x128xf32, #tpu.memory_space<vmem>>, vector<1x8x128xf32>,
    %c0_16 = arith.constant 0 : index
    %c0_17 = arith.constant 0 : index
    %c0_18 = arith.constant 0 : index
    %26 = vector.load %arg6[%c0_16, %c0_17, %c0_18] : memref<1x1x128xf32, #tpu.memory_space<vmem>>, vector<1x1x128xf32>
    tpu.vector_store %arg6[%c0_16, %c0_17, %c0_18], %4 {strides = array<i32>} : memref<1x1x128xf32, #tpu.memory_space<vmem>>, vector<1x1x128xf32>,
    %c0_19 = arith.constant 0 : index
    %c0_20 = arith.constant 0 : index
    %c0_21 = arith.constant 0 : index
    %27 = vector.load %arg7[%c0_19, %c0_20, %c0_21] : memref<1x1x128xf32, #tpu.memory_space<vmem>>, vector<1x1x128xf32>
    tpu.vector_store %arg7[%c0_19, %c0_20, %c0_21], %17 {strides = array<i32>} : memref<1x1x128xf32, #tpu.memory_space<vmem>>, vector<1x1x128xf32>,
    return
  }
  func.func @transform_0(%arg0: i32, %arg1: i32) -> (i32, i32, i32) {
    %c0_i32 = arith.constant 0 : i32
    %c0_i32_0 = arith.constant 0 : i32
    return %arg0, %c0_i32, %arg1 : i32, i32, i32
  }
  func.func @transform_1(%arg0: i32, %arg1: i32) -> (i32, i32, i32) {
    %c0_i32 = arith.constant 0 : i32
    %c0_i32_0 = arith.constant 0 : i32
    %c0_i32_1 = arith.constant 0 : i32
    return %c0_i32, %c0_i32_0, %arg1 : i32, i32, i32
  }
  func.func @transform_2(%arg0: i32, %arg1: i32) -> (i32, i32, i32) {
    %c0_i32 = arith.constant 0 : i32
    %c0_i32_0 = arith.constant 0 : i32
    %c0_i32_1 = arith.constant 0 : i32
    return %c0_i32, %c0_i32_0, %arg1 : i32, i32, i32
  }
  func.func @transform_3(%arg0: i32, %arg1: i32) -> (i32, i32, i32) {
    %c0_i32 = arith.constant 0 : i32
    %c0_i32_0 = arith.constant 0 : i32
    return %arg0, %c0_i32, %arg1 : i32, i32, i32
  }
  func.func @transform_4(%arg0: i32, %arg1: i32) -> (i32, i32, i32) {
    %c0_i32 = arith.constant 0 : i32
    %c0_i32_0 = arith.constant 0 : i32
    return %arg0, %c0_i32, %arg1 : i32, i32, i32
  }
  func.func @transform_5(%arg0: i32, %arg1: i32) -> (i32, i32, i32) {
    %c0_i32 = arith.constant 0 : i32
    %c0_i32_0 = arith.constant 0 : i32
    return %arg0, %c0_i32, %arg1 : i32, i32, i32
  }
}

</mosaic_0001>

<bundles_post_ra>
// kernel: tpu_custom_call.1
= control target key start
LH: loop header
LB: loop body
LE: loop exit
PB: predicated region body
PF: predicated region fallthrough
CT: control target
= control target key end

     0   :  { %11 = vsyncpa [#allocation3], 0  ;;  %s1079_s0 = inlined_call_operand.hbm [shape: f32[2,8,128], index: 0, kind: input, shape index: {}]   ;;  %s1080_s1 = inlined_call_operand.vmem [shape: f32[1,1,128], index: 1, kind: input, shape index: {}]   ;;  %s1081_s2 = inlined_call_operand.vmem [shape: f32[1,1,128], index: 2, kind: input, shape index: {}]   ;;  %s1082_s3 = inlined_call_operand.hbm [shape: f32[2,8,128], index: 3, kind: output, shape index: {0}]   ;;  %s1083_s4 = inlined_call_operand.hbm [shape: f32[2,1,128], index: 4, kind: output, shape index: {1}]   ;;  %s1084_s5 = inlined_call_operand.hbm [shape: f32[2,1,128], index: 5, kind: output, shape index: {2}]  }
   0x1   :  { %13 = vsyncpa [#allocation3 + $0x1], 0 }
   0x2   :  { %14 = vsyncpa [#allocation4], 0 }
   0x3   :  { %16 = vsyncpa [#allocation4 + $0x1], 0 }
   0x4   :  { %17 = vsyncpa [#allocation7], 0 }
   0x5   :  { %19 = vsyncpa [#allocation7 + $0x1], 0  ;;  %s848_s18 = smov 0   ;;  %s850_s19 = smov 0  }
   0x6   :  { %s852_s20 = smov 0   ;;  %s854_s21 = smov 0  }
   0x7   :  { %s856_s22 = smov 0   ;;  %s858_s23 = smov 0  }
   0x8 LB: > { %s879_s24 = sadd.s32 4294967295, %s812_s23   ;;  %s1085_s25 = sadd.s32 4294967294, %s812_s23   ;;  %s812_s23 = sphi %s858_s23, %s25_s23   ;;  %s808_s22 = sphi %s856_s22, %s1101_s22   ;;  %s804_s21 = sphi %s854_s21, %s1100_s21   ;;  %s800_s20 = sphi %s852_s20, %s1099_s20   ;;  %s796_s19 = sphi %s850_s19, %s1098_s19   ;;  %s792_s18 = sphi %s848_s18, %s1097_s18  }
   0x9   : > { %s37_s26 = sadd.s32 1, %s808_s22  ;;  %s46_s27 = sadd.s32 1, %s800_s20 }
   0xa   : > { %p39_p0 = scmp.ge.s32.totalorder %s37_s26, 2  ;;  %p53_p1 = scmp.ne.s32.totalorder %s800_s20, %s796_s19 }
   0xb   : > { %p54_p2 = scmp.eq.s32.totalorder %s812_s23, 0  ;;  %p59_p3 = scmp.ne.s32.totalorder %s796_s19, %s792_s18 }
   0xc   : > { %s1103_s26 = smov (%p39_p0, %s37_s26), 0  ;;  %p60_p5 = scmp.eq.s32.totalorder %s879_s24, 0 }
   0xd   : > { %p891_p4 = por %p54_p2, %p53_p1  ;;  %s41_s29 = ssub.s32 %s808_s22, %s1103_s26 }
   0xe   : > { %p137_p6 = scmp.eq.s32.totalorder %s879_s24, 1  ;;  %p44_p7 = scmp.eq.s32.totalorder %s41_s29, 0 }
   0xf   : > { %p899_p8 = por %p60_p5, %p59_p3  ;;  %p143_p10 = scmp.eq.s32.totalorder %s1085_s25, 1 }
  0x10   : > { %p903_p9 = por %p137_p6, %p53_p1  ;;  %p596_p13 = scmp.lt.s32.totalorder %s812_s23, 2 }
  0x11   : > { %s910_s7 = scalar_select %p44_p7, %s800_s20, %s46_s27  }
  0x12   : > { %p912_p11 = por %p143_p10, %p59_p3  ;;  %s231_s9 = sand.u32 1, %s800_s20  }
  0x13   : > { %s562_s10 = sshll.u32 %s231_s9, 3  ;;  %s563_s11 = sshll.u32 %s808_s22, 7 }
  0x14   : > { %s1090_s8 = scalar_select %p912_p11, 1, 0 }
  0x15   : > { %s241_s14 = scalar_lea.hbm %s1079_s0, %s563_s11  ;;  %s235_s15 = scalar_lea.vmem [#allocation2], %s562_s10 }
  0x16   : > { %s243_s16 = sshll.u32 %s235_s15, 4  ;;  %p925_p0 = pnand %p596_p13, %p891_p4  ;;  %s244_s16 = int_to_ptr.vmem [resolvable:$true] %s243_s16 }
  0x17   : > { %p564_p1 = scmp.ge.s32.totalorder %s812_s23, 1  ;;  %p248_p2 = scmp.lt.s32.totalorder %s812_s23, 3 }
  0x18   : > { %s232_s27 = scalar_lea.sflag [#allocation3], %s231_s9  ;;  %p650_p3 = pneg %p925_p0 }
  0x19   : > { %s661_s29 = scalar_lea.vmem %s244_s16, 128  ;;  %s814_s12 = smov [#allocation2]  }
  0x1a   : > { %p662_p5 = scmp.ne.s32.totalorder %s244_s16, %s661_s29  ;;  %s666_s11 = sshll.u32 %s814_s12, 4  ;;  %s667_s11 = int_to_ptr.vmem [resolvable:$false] %s666_s11 }
  0x1b   : > { %s668_s10 = scalar_lea.vmem %s667_s11, 256  ;;  %p669_p10 = scmp.lt.s32.totalorder %s244_s16, %s667_s11 }
  0x1c   : > { %p664_p6 = pnand %p662_p5, %p650_p3  ;;  %p670_p12 = scmp.lt.s32.totalorder %s668_s10, %s661_s29 }
  0x1e   : > { %p665_p7 = pneg %p664_p6  ;;  %p671_p4 = por %p670_p12, %p669_p10 }
  0x20   : > { %p672_p13 = pnand %p671_p4, %p665_p7 }
  0x22   : > { %675 = shalt.err (!%p672_p13)
}
  0x23   : > { %585 = dma.hbm_to_vmem [thread:$0]  (!%p925_p0), %s241_s14, 128, %s244_s16, %s232_s27  }
  0x24   : > { %p249_p11 = pnand %p564_p1, %p248_p2 }
  0x25   : > { %s940_s28 = sand.u32 (!%p249_p11), 1, %s796_s19  }
  0x26   : > { %252 = sbr.rel (%p249_p11) target bundleno = 141 (0x8d), region = 32  ;;  %s1086_s9 = sshll.u32 (!%p249_p11), %s940_s28, 3 }
  0x27   : > { %s255_s13 = scalar_lea.sflag (!%p249_p11), [#allocation3], %s940_s28  ;;  %s258_s15 = scalar_lea.vmem (!%p249_p11), [#allocation2], %s1086_s9 }
  0x2b   : > { %779 = dma.done.wait (%p899_p8), %s255_s13, 128  }
  0x2c   : > { %781 = vsyncadd (%p899_p8), %s255_s13, 4294967168  ;;  %v305_v0 = vld [vmem:[%s258_s15] sm:$0xff]  ;;  %s292_s14 = scalar_lea.vmem [#allocation6], %s940_s28  ;;  %s351_s17 = sand.u32 1, %s879_s24  }
  0x2d   : > { %v306_v1 = vrot.slane %v305_v0, 4  ;;  %s383_s16 = sshll.u32 %s292_s14, 4  ;;  %s570_s27 = sshll.u32 %s804_s21, 4  ;;  %s953_s16 = int_to_ptr.vmem [resolvable:$true] %s383_s16 }
  0x2e   : > { %s381_s12 = scalar_lea.hbm %s1083_s4, %s570_s27  ;;  %s962_s11 = scalar_lea.sflag [#allocation7], %s351_s17 }
  0x2f   : > { %v307_v2 = vadd.f32 %v306_v1, %v305_v0  ;;  %s676_s10 = scalar_lea.vmem %s953_s16, 16  ;;  %s815_s24 = smov [#allocation6]  }
  0x30   : > { %p677_p8 = scmp.ne.s32.totalorder %s953_s16, %s676_s10  ;;  %s680_s13 = sshll.u32 %s815_s24, 4  ;;  %s681_s13 = int_to_ptr.vmem [resolvable:$false] %s680_s13 }
  0x31   : > { %v308_v3 = vrot.slane %v307_v2, 2  ;;  %s682_s15 = scalar_lea.vmem %s681_s13, 32  ;;  %p683_p0 = scmp.lt.s32.totalorder %s953_s16, %s681_s13 }
  0x32   : > { %p678_p11 = pnand %p677_p8, %p903_p9  ;;  %p684_p1 = scmp.lt.s32.totalorder %s682_s15, %s676_s10 }
  0x33   : > { %v309_v4 = vadd.f32 %v308_v3, %v307_v2 }
  0x34   : > { %p679_p12 = pneg %p678_p11  ;;  %p685_p2 = por %p684_p1, %p683_p0 }
  0x35   : > { %v310_v5 = vrot.slane %v309_v4, 1 }
  0x36   : > { %p686_p3 = pnand %p685_p2, %p679_p12 }
  0x37   : > { %v311_v6 = vadd.f32 %v310_v5, %v309_v4 }
  0x39   : > { %v313_v7 = vmul.f32 0.125, %v311_v6 }
  0x3b   : > { %v960_v8 = vsub.f32 %v305_v0, %v313_v7  ;;  %344 = vst [vmem:[%s292_s14] sm:$0x1] %v313_v7 }
  0x3c   : > { %689 = shalt.err (!%p686_p3)
}
  0x3d   : > { %s690_s30 = scalar_lea.hbm %s381_s12, 16  ;;  %s694_s29 = scalar_lea.hbm %s1083_s4, 32 }
  0x3e   : > { %p691_p5 = scmp.ne.s32.totalorder %s381_s12, %s690_s30  ;;  %p695_p10 = scmp.lt.s32.totalorder %s381_s12, %s1083_s4 }
  0x3f   : > { %p696_p4 = scmp.lt.s32.totalorder %s694_s29, %s690_s30 }
  0x40   : > { %p692_p6 = pnand %p691_p5, %p903_p9 }
  0x41   : > { %p697_p13 = por %p696_p4, %p695_p10 }
  0x42   : > { %p693_p7 = pneg %p692_p6 }
  0x44   : > { %p698_p8 = pnand %p697_p13, %p693_p7 }
  0x46   : > { %701 = shalt.err (!%p698_p8)
}
  0x47   : > { %577 = dma.vmem_to_hbm [thread:$0]  (%p903_p9), %s953_s16, 16, %s381_s12, %s962_s11   ;;  %v315_v9 = vmul.f32 %v960_v8, %v960_v8  ;;  %v330_v18 = vlaneseq  ;;  %v326_v20 = vld [vmem:[%s1080_s1] sm:$0x1] }
  0x48   : > { %s298_s16 = scalar_lea.vmem [#allocation8], %s940_s28  ;;  %s994_s13 = scalar_lea.hbm %s1084_s5, %s570_s27  ;;  %v567_v26 = vld [vmem:[%s1081_s2] ss:$0 sm:$0xff] }
  0x49   : > { %v316_v10 = vrot.slane %v315_v9, 4  ;;  %v331_v19 = vshrl.u32 %v330_v18, 7  ;;  %s397_s12 = sshll.u32 %s298_s16, 4  ;;  %s1092_s15 = sshll.u32 %s940_s28, 3  ;;  %s987_s12 = int_to_ptr.vmem [resolvable:$true] %s397_s12 }
  0x4a   : > { %s998_s30 = scalar_lea.vmem [#allocation5], %s1092_s15  ;;  %s702_s9 = scalar_lea.vmem %s987_s12, 16 }
  0x4b   : > { %v317_v11 = vadd.f32 %v316_v10, %v315_v9  ;;  %v332_v21 = vsub.s32 0, %v331_v19  ;;  %s369_s14 = sshll.u32 %s998_s30, 4  ;;  %p703_p11 = scmp.ne.s32.totalorder %s987_s12, %s702_s9  ;;  %s1029_s14 = int_to_ptr.vmem [resolvable:$true] %s369_s14 }
  0x4c   : > { %s816_s10 = smov [#allocation8]  }
  0x4d   : > { %v318_v12 = vrot.slane %v317_v11, 2  ;;  %p704_p12 = pnand %p703_p11, %p903_p9  ;;  %s706_s27 = sshll.u32 %s816_s10, 4  ;;  %s707_s27 = int_to_ptr.vmem [resolvable:$false] %s706_s27 }
  0x4e   : > { %s708_s24 = scalar_lea.vmem %s707_s27, 32  ;;  %p709_p1 = scmp.lt.s32.totalorder %s987_s12, %s707_s27 }
  0x4f   : > { %v319_v13 = vadd.f32 %v318_v12, %v317_v11  ;;  %p705_p0 = pneg %p704_p12  ;;  %p710_p2 = scmp.lt.s32.totalorder %s708_s24, %s702_s9 }
  0x51   : > { %v320_v14 = vrot.slane %v319_v13, 1  ;;  %p711_p3 = por %p710_p2, %p709_p1 }
  0x53   : > { %v321_v15 = vadd.f32 %v320_v14, %v319_v13  ;;  %p712_p5 = pnand %p711_p3, %p705_p0 }
  0x55   : > { %v322_v16 = vmul.f32 0.125, %v321_v15 }
  0x57   : > { %v323_v17 = vadd.f32 1e-05, %v322_v16 }
  0x59   : > { %646 = vrsqrt.f32 %v323_v17 }
  0x66   : > { %v647_v22 = vpop.eup %646 }
  0x67   : > { %v327_v23 = vmul.f32 %v647_v22, %v326_v20  ;;  %v325_v24 = vmul.f32 %v647_v22, %v323_v17 }
  0x69   : > { %v333_v25 = vrot.slane %v327_v23, %v332_v21  ;;  %345 = vst [vmem:[%s298_s16] sm:$0x1] %v325_v24 }
  0x6a   : > { %715 = shalt.err (!%p712_p5)
}
  0x6b   : > { %s716_s16 = scalar_lea.hbm %s994_s13, 16  ;;  %s720_s25 = scalar_lea.hbm %s1084_s5, 32 }
  0x6c   : > { %p717_p6 = scmp.ne.s32.totalorder %s994_s13, %s716_s16  ;;  %p721_p4 = scmp.lt.s32.totalorder %s994_s13, %s1084_s5 }
  0x6d   : > { %p722_p13 = scmp.lt.s32.totalorder %s720_s25, %s716_s16 }
  0x6e   : > { %p718_p7 = pnand %p717_p6, %p903_p9 }
  0x6f   : > { %p723_p8 = por %p722_p13, %p721_p4 }
  0x70   : > { %p719_p10 = pneg %p718_p7 }
  0x72   : > { %p724_p11 = pnand %p723_p8, %p719_p10 }
  0x74   : > { %727 = shalt.err (!%p724_p11)
}
  0x75   : > { %578 = dma.vmem_to_hbm [thread:$0]  (%p903_p9), %s987_s12, 16, %s994_s13, %s962_s11   ;;  %v335_v27 = vmul.f32 %v333_v25, %v960_v8 }
  0x76   : > { %s1093_s17 = sshll.u32 %s804_s21, 7  ;;  %s347_s16 = scalar_lea.sflag [#allocation4], %s940_s28 }
  0x77   : > { %v342_v28 = vadd.f32 %v567_v26, %v335_v27  ;;  %s367_s24 = scalar_lea.hbm %s1082_s3, %s1093_s17  ;;  %s728_s15 = scalar_lea.vmem %s1029_s14, 128 }
  0x78   : > { %p729_p12 = scmp.ne.s32.totalorder %s1029_s14, %s728_s15  ;;  %s817_s11 = smov [#allocation5]  }
  0x79   : > { %343 = vst [vmem:[%s998_s30] sm:$0xff] %v342_v28  ;;  %s732_s12 = sshll.u32 %s817_s11, 4  ;;  %s733_s12 = int_to_ptr.vmem [resolvable:$false] %s732_s12 }
  0x7a   : > { %p730_p0 = pnand %p729_p12, %p903_p9  ;;  %s734_s13 = scalar_lea.vmem %s733_s12, 256 }
  0x7b   : > { %p735_p2 = scmp.lt.s32.totalorder %s1029_s14, %s733_s12  ;;  %p736_p3 = scmp.lt.s32.totalorder %s734_s13, %s728_s15 }
  0x7c   : > { %p731_p1 = pneg %p730_p0 }
  0x7d   : > { %p737_p5 = por %p736_p3, %p735_p2 }
  0x7f   : > { %p738_p6 = pnand %p737_p5, %p731_p1 }
  0x81   : > { %741 = shalt.err (!%p738_p6)
}
  0x82   : > { %s742_s21 = scalar_lea.hbm %s367_s24, 128  ;;  %s746_s29 = scalar_lea.hbm %s1082_s3, 256 }
  0x83   : > { %p743_p7 = scmp.ne.s32.totalorder %s367_s24, %s742_s21  ;;  %p747_p13 = scmp.lt.s32.totalorder %s367_s24, %s1082_s3 }
  0x84   : > { %p748_p8 = scmp.lt.s32.totalorder %s746_s29, %s742_s21 }
  0x85   : > { %p744_p10 = pnand %p743_p7, %p903_p9 }
  0x86   : > { %p749_p11 = por %p748_p8, %p747_p13 }
  0x87   : > { %p745_p4 = pneg %p744_p10 }
  0x89   : > { %p750_p12 = pnand %p749_p11, %p745_p4 }
  0x8b   : > { %753 = shalt.err (!%p750_p12)
}
  0x8c   : > { %576 = dma.vmem_to_hbm [thread:$0]  (%p903_p9), %s1029_s14, 128, %s367_s24, %s347_s16  }
  0x8d PF: > { %s409_s17 = sand.u32 1, %s792_s18   ;;  %p1094_p0 = scmp.ne.s32.totalorder %s1090_s8, 0 }
  0x8e   : > { %p1095_p1 = scmp.ge.s32.totalorder %s812_s23, 2  ;;  %s410_s9 = scalar_lea.sflag [#allocation4], %s409_s17 }
  0x90   : > { %p587_p2 = pnand %p1095_p1, %p1094_p0 }
  0x92   : > { %p588_p3 = pneg %p587_p2 }
  0x94   : > { %783 = dma.done.wait (%p588_p3), %s410_s9, 128  }
  0x95   : > { %785 = vsyncadd (%p588_p3), %s410_s9, 4294967168  ;;  %s1096_s27 = sadd.s32 4294967294, %s812_s23  }
  0x96   : > { %s418_s15 = sand.u32 1, %s1096_s27  }
  0x97   : > { %s419_s11 = scalar_lea.sflag [#allocation7], %s418_s15 }
  0x98   : > { %787 = dma.done.wait (%p588_p3), %s419_s11, 32  }
  0x99   : > { %789 = vsyncadd (%p588_p3), %s419_s11, 4294967264  ;;  %s25_s23 = sadd.s32 1, %s812_s23   ;;  %s1097_s18 = smov %s796_s19 }
  0x9a   : > { %p22_p9 = scmp.ge.s32.totalorder %s25_s23, 4   ;;  %s1098_s19 = smov %s800_s20 }
  0x9b   : > { %s1099_s20 = smov %s910_s7  ;;  %s1100_s21 = smov %s808_s22 }
  0x9c   : > { %s1101_s22 = smov %s1103_s26  ;;  %24 = sbr.rel (!%p22_p9) target bundleno = 8 (0x8), region = 115 }
  0xa1   :  { %431 = vsyncpa [#allocation3], 1 }
  0xa2   :  { %433 = vsyncpa [#allocation3 + $0x1], 1 }
  0xa3   :  { %434 = vsyncpa [#allocation4], 1 }
  0xa4   :  { %436 = vsyncpa [#allocation4 + $0x1], 1 }
  0xa5   :  { %437 = vsyncpa [#allocation7], 1 }
  0xa6   :  { %439 = vsyncpa [#allocation7 + $0x1], 1 }

</bundles_post_ra>
